<compile_context>
chip_gen: v6e
topology: v6e:2x2x1
jax: 0.10.0
libtpu: 0.0.40
codegen_flags: <defaults>
</compile_context>

<pallas_src>
import jax
import jax.numpy as jnp
from jax.experimental import pallas as pl
from jax.experimental.pallas import tpu as pltpu

SUBLANE = 8     # f32 sublane packing (second-to-last dim)


def _round_up(x, m):
    return (x + m - 1) // m * m


def encoder_kernel(x_ref, w1_ref, b1_ref, w2_ref, b2_ref, w3_ref, b3_ref, o_ref):
    # Fused 3-layer MLP for one batch tile.  x may arrive as bf16 (streaming
    # optimization); it is widened once in-register and everything downstream
    # (weights, bias add, ReLU, accumulation) is f32.
    x = x_ref[...].astype(jnp.float32)
    h1 = jnp.dot(x, w1_ref[...], preferred_element_type=jnp.float32) + b1_ref[...]
    h1 = jnp.maximum(h1, 0.0)
    h2 = jnp.dot(h1, w2_ref[...], preferred_element_type=jnp.float32) + b2_ref[...]
    h2 = jnp.maximum(h2, 0.0)
    out = jnp.dot(h2, w3_ref[...], preferred_element_type=jnp.float32) + b3_ref[...]
    o_ref[...] = out.astype(o_ref.dtype)


def encoder_forward(x, params, *, block_b=8192, use_bf16=False, x_buffer_count=2):
    """Forward pass of the Encoder MLP.

    x: (B, input_dim) float32. params: dict of w1,b1,w2,b2,w3,b3.

    block_b: target batch-tile size (review-recommended 4096..8192).  The tile
      is additionally capped at ~half the (padded) batch so the 1-D grid has at
      least 2 steps and v7x's two TensorCores both get work.
    use_bf16: stream x as bf16 (weights stay f32 and VMEM-resident, accumulation
      stays f32).  Halves the streamed HBM read on every generation; helps v5e
      (lowest HBM BW) the most.  Accuracy loss is only the bf16 quantization of
      the input (~1e-2 relative worst case through the ReLU chain).
    x_buffer_count: input pipeline depth for the streamed x tile; set to 3 only
      if xprof shows exposed input DMA at the chosen tile size.
    """
    w1, b1 = params["w1"], params["b1"]
    w2, b2 = params["w2"], params["b2"]
    w3, b3 = params["w3"], params["b3"]

    B, input_dim = x.shape
    latent_dim = w3.shape[1]
    hid1, hid2 = w1.shape[1], w2.shape[1]

    # --- Batch tiling.  Pad B to a sublane multiple; size the tile so that
    # (a) it never exceeds block_b, (b) there are >=2 grid steps whenever the
    # batch has more than one sublane row (v7x megacore), (c) every block is
    # full (pad, then slice the tail off on the wrapper boundary).
    b_rows = _round_up(B, SUBLANE)
    if b_rows > SUBLANE:
        tb = min(block_b, _round_up(pl.cdiv(b_rows, 2), SUBLANE))
    else:
        tb = SUBLANE
    tb = _round_up(tb, SUBLANE)
    b_pad = _round_up(b_rows, tb)
    if b_pad != B:
        x = jnp.pad(x, ((0, b_pad - B), (0, 0)))

    if use_bf16:
        # Only the streamed operand changes HBM traffic; resident weights stay f32.
        x = x.astype(jnp.bfloat16)

    grid = (b_pad // tb,)

    # --- VMEM budget: double-buffered x/out tiles + resident weights + the
    # h1/h2 intermediates Mosaic materializes.  Capped at v7x's 32 MiB scoped
    # limit; at tb=8192 this is only ~6 MiB, far below every generation's limit.
    w_bytes = sum(int(a.size) * a.dtype.itemsize for a in (w1, b1, w2, b2, w3, b3))
    x_bytes = tb * input_dim * x.dtype.itemsize
    out_bytes = tb * latent_dim * 4
    inter_bytes = tb * (hid1 + hid2) * 4
    vmem_limit = int(min(32 * 1024 * 1024,
                         max(4 * 1024 * 1024,
                             max(2, x_buffer_count) * x_bytes + 2 * out_bytes
                             + w_bytes + inter_bytes + (1 << 20))))

    cost = pl.CostEstimate(
        flops=2 * b_pad * (input_dim * hid1 + hid1 * hid2 + hid2 * latent_dim),
        transcendentals=0,
        bytes_accessed=(b_pad * input_dim * x.dtype.itemsize
                        + b_pad * latent_dim * 4 + w_bytes),
    )

    # Weights/biases: full-array blocks with constant index maps -> VMEM-resident,
    # no re-DMA across grid steps.
    def resident(a):
        return pl.BlockSpec(a.shape, lambda i: (0, 0))

    # Streamed x tile; optionally deepen its pipeline (sweep 2 vs 3 on real HW).
    if x_buffer_count > 2:
        x_spec = pl.BlockSpec((tb, input_dim), lambda i: (i, 0),
                              pipeline_mode=pl.Buffered(x_buffer_count))
    else:
        x_spec = pl.BlockSpec((tb, input_dim), lambda i: (i, 0))

    out_pad = pl.pallas_call(
        encoder_kernel,
        # Unpadded output width: last block dim equals the full array dim (legal),
        # cutting output HBM bytes by 8x vs the previous 128-lane padding.
        out_shape=jax.ShapeDtypeStruct((b_pad, latent_dim), jnp.float32),
        grid=grid,
        in_specs=[
            x_spec,                                   # x: tiled over batch
            resident(w1), resident(b1),
            resident(w2), resident(b2),
            resident(w3), resident(b3),
        ],
        out_specs=pl.BlockSpec((tb, latent_dim), lambda i: (i, 0)),
        compiler_params=pltpu.CompilerParams(
            dimension_semantics=("parallel",),        # batch axis -> both TCs on v7x
            vmem_limit_bytes=vmem_limit,
        ),
        cost_estimate=cost,
    )(x, w1, b1, w2, b2, w3, b3)

    # Padded batch rows carry bias/ReLU garbage; always slice them off here.
    return out_pad[:B, :]


def init_params(key, input_dim, latent_dim):
    """Deterministic init mimicking nn.Linear's uniform(-1/sqrt(fan_in), 1/sqrt(fan_in))."""
    dims = [(input_dim, 64), (64, 32), (32, latent_dim)]
    params = {}
    for i, (fan_in, fan_out) in enumerate(dims, start=1):
        key, kw, kb = jax.random.split(key, 3)
        bound = 1.0 / jnp.sqrt(jnp.float32(fan_in))
        params[f"w{i}"] = jax.random.uniform(
            kw, (fan_in, fan_out), jnp.float32, minval=-bound, maxval=bound
        )
        params[f"b{i}"] = jax.random.uniform(
            kb, (1, fan_out), jnp.float32, minval=-bound, maxval=bound
        )
    return params


def encoder_reference(x, params):
    h1 = jnp.maximum(x @ params["w1"] + params["b1"], 0.0)
    h2 = jnp.maximum(h1 @ params["w2"] + params["b2"], 0.0)
    return h2 @ params["w3"] + params["b3"]


if __name__ == "__main__":
    key = jax.random.PRNGKey(0)
    B, input_dim, latent_dim = 8, 32, 16

    key, kx = jax.random.split(key)
    x = jax.random.normal(kx, (B, input_dim), jnp.float32)
    params = init_params(key, input_dim, latent_dim)

    # f32 path (matches PyTorch module semantics).
    out = jax.block_until_ready(encoder_forward(x, params))
    ref = encoder_reference(x, params)
    assert out.shape == (B, latent_dim)
    assert jnp.allclose(out, ref, atol=1e-5, rtol=1e-5)

    # bf16 input-streaming path (weights/accumulation stay f32) -- loose tolerance.
    out_bf16 = jax.block_until_ready(encoder_forward(x, params, use_bf16=True))
    assert out_bf16.shape == (B, latent_dim)
    assert jnp.allclose(out_bf16, ref, atol=5e-2, rtol=5e-2)

    # Larger, ragged batch to exercise the tiled / padded multi-block path
    # (tile capped at half the padded batch -> >=2 grid steps).
    key, kx2 = jax.random.split(key)
    x_big = jax.random.normal(kx2, (1000, input_dim), jnp.float32)
    out_big = jax.block_until_ready(encoder_forward(x_big, params, block_b=512))
    ref_big = encoder_reference(x_big, params)
    assert out_big.shape == (1000, latent_dim)
    assert jnp.allclose(out_big, ref_big, atol=1e-4, rtol=1e-4)

    print("KERNEL_OK")
</pallas_src>

<mosaic_0001>
module attributes {stable_mosaic.version = 11 : i64} {
  func.func @encoder_kernel(%arg0: i32, %arg1: memref<8x32xf32, #tpu.memory_space<vmem>>, %arg2: memref<32x64xf32, #tpu.memory_space<vmem>>, %arg3: memref<1x64xf32, #tpu.memory_space<vmem>>, %arg4: memref<64x32xf32, #tpu.memory_space<vmem>>, %arg5: memref<1x32xf32, #tpu.memory_space<vmem>>, %arg6: memref<32x16xf32, #tpu.memory_space<vmem>>, %arg7: memref<1x16xf32, #tpu.memory_space<vmem>>, %arg8: memref<8x16xf32, #tpu.memory_space<vmem>>) attributes {dimension_semantics = [#tpu.dimension_semantics<parallel>], iteration_bounds = array<i64: 1>, scalar_prefetch = 0 : i64, scratch_operands = 0 : i64, tpu.core_type = #tpu.core_type<tc>, window_params = [{transform_indices = @transform_0, window_bounds = array<i64: 8, 32>}, {pipeline_mode = #tpu.pipeline_mode<synchronous>, transform_indices = @transform_1, window_bounds = array<i64: 32, 64>}, {pipeline_mode = #tpu.pipeline_mode<synchronous>, transform_indices = @transform_2, window_bounds = array<i64: 1, 64>}, {pipeline_mode = #tpu.pipeline_mode<synchronous>, transform_indices = @transform_3, window_bounds = array<i64: 64, 32>}, {pipeline_mode = #tpu.pipeline_mode<synchronous>, transform_indices = @transform_4, window_bounds = array<i64: 1, 32>}, {pipeline_mode = #tpu.pipeline_mode<synchronous>, transform_indices = @transform_5, window_bounds = array<i64: 32, 16>}, {pipeline_mode = #tpu.pipeline_mode<synchronous>, transform_indices = @transform_6, window_bounds = array<i64: 1, 16>}, {transform_indices = @transform_7, window_bounds = array<i64: 8, 16>}]} {
    %c0 = arith.constant 0 : index
    %c0_0 = arith.constant 0 : index
    %0 = vector.load %arg1[%c0, %c0_0] : memref<8x32xf32, #tpu.memory_space<vmem>>, vector<8x32xf32>
    %c0_1 = arith.constant 0 : index
    %c0_2 = arith.constant 0 : index
    %1 = vector.load %arg2[%c0_1, %c0_2] : memref<32x64xf32, #tpu.memory_space<vmem>>, vector<32x64xf32>
    %cst = arith.constant dense<0.000000e+00> : vector<8x64xf32>
    %2 = tpu.matmul %0, %1, %cst {dimension_numbers = #tpu.dot_dimension_numbers<[1], [0], [0], [1], [0, 0, 1, 1], [], []>} : vector<8x32xf32>, vector<32x64xf32>, vector<8x64xf32> -> vector<8x64xf32>
    %c0_3 = arith.constant 0 : index
    %c0_4 = arith.constant 0 : index
    %3 = vector.load %arg3[%c0_3, %c0_4] : memref<1x64xf32, #tpu.memory_space<vmem>>, vector<1x64xf32>
    %4 = vector.broadcast %3 : vector<1x64xf32> to vector<8x64xf32>
    %5 = arith.addf %2, %4 : vector<8x64xf32>
    %cst_5 = arith.constant 0.000000e+00 : f32
    %6 = vector.broadcast %cst_5 : f32 to vector<8x64xf32>
    %7 = arith.maximumf %5, %6 : vector<8x64xf32>
    %c0_6 = arith.constant 0 : index
    %c0_7 = arith.constant 0 : index
    %8 = vector.load %arg4[%c0_6, %c0_7] : memref<64x32xf32, #tpu.memory_space<vmem>>, vector<64x32xf32>
    %cst_8 = arith.constant dense<0.000000e+00> : vector<8x32xf32>
    %9 = tpu.matmul %7, %8, %cst_8 {dimension_numbers = #tpu.dot_dimension_numbers<[1], [0], [0], [1], [0, 0, 1, 1], [], []>} : vector<8x64xf32>, vector<64x32xf32>, vector<8x32xf32> -> vector<8x32xf32>
    %c0_9 = arith.constant 0 : index
    %c0_10 = arith.constant 0 : index
    %10 = vector.load %arg5[%c0_9, %c0_10] : memref<1x32xf32, #tpu.memory_space<vmem>>, vector<1x32xf32>
    %11 = vector.broadcast %10 : vector<1x32xf32> to vector<8x32xf32>
    %12 = arith.addf %9, %11 : vector<8x32xf32>
    %cst_11 = arith.constant 0.000000e+00 : f32
    %13 = vector.broadcast %cst_11 : f32 to vector<8x32xf32>
    %14 = arith.maximumf %12, %13 : vector<8x32xf32>
    %c0_12 = arith.constant 0 : index
    %c0_13 = arith.constant 0 : index
    %15 = vector.load %arg6[%c0_12, %c0_13] : memref<32x16xf32, #tpu.memory_space<vmem>>, vector<32x16xf32>
    %cst_14 = arith.constant dense<0.000000e+00> : vector<8x16xf32>
    %16 = tpu.matmul %14, %15, %cst_14 {dimension_numbers = #tpu.dot_dimension_numbers<[1], [0], [0], [1], [0, 0, 1, 1], [], []>} : vector<8x32xf32>, vector<32x16xf32>, vector<8x16xf32> -> vector<8x16xf32>
    %c0_15 = arith.constant 0 : index
    %c0_16 = arith.constant 0 : index
    %17 = vector.load %arg7[%c0_15, %c0_16] : memref<1x16xf32, #tpu.memory_space<vmem>>, vector<1x16xf32>
    %18 = vector.broadcast %17 : vector<1x16xf32> to vector<8x16xf32>
    %19 = arith.addf %16, %18 : vector<8x16xf32>
    %c0_17 = arith.constant 0 : index
    %c0_18 = arith.constant 0 : index
    %20 = vector.load %arg8[%c0_17, %c0_18] : memref<8x16xf32, #tpu.memory_space<vmem>>, vector<8x16xf32>
    tpu.vector_store %arg8[%c0_17, %c0_18], %19 {strides = array<i32>} : memref<8x16xf32, #tpu.memory_space<vmem>>, vector<8x16xf32>,
    return
  }
  func.func @transform_0(%arg0: i32) -> (i32, i32) {
    %c0_i32 = arith.constant 0 : i32
    %c0_i32_0 = arith.constant 0 : i32
    return %arg0, %c0_i32 : i32, i32
  }
  func.func @transform_1(%arg0: i32) -> (i32, i32) {
    %c0_i32 = arith.constant 0 : i32
    %c0_i32_0 = arith.constant 0 : i32
    %c0_i32_1 = arith.constant 0 : i32
    return %c0_i32, %c0_i32_0 : i32, i32
  }
  func.func @transform_2(%arg0: i32) -> (i32, i32) {
    %c0_i32 = arith.constant 0 : i32
    %c0_i32_0 = arith.constant 0 : i32
    %c0_i32_1 = arith.constant 0 : i32
    return %c0_i32, %c0_i32_0 : i32, i32
  }
  func.func @transform_3(%arg0: i32) -> (i32, i32) {
    %c0_i32 = arith.constant 0 : i32
    %c0_i32_0 = arith.constant 0 : i32
    %c0_i32_1 = arith.constant 0 : i32
    return %c0_i32, %c0_i32_0 : i32, i32
  }
  func.func @transform_4(%arg0: i32) -> (i32, i32) {
    %c0_i32 = arith.constant 0 : i32
    %c0_i32_0 = arith.constant 0 : i32
    %c0_i32_1 = arith.constant 0 : i32
    return %c0_i32, %c0_i32_0 : i32, i32
  }
  func.func @transform_5(%arg0: i32) -> (i32, i32) {
    %c0_i32 = arith.constant 0 : i32
    %c0_i32_0 = arith.constant 0 : i32
    %c0_i32_1 = arith.constant 0 : i32
    return %c0_i32, %c0_i32_0 : i32, i32
  }
  func.func @transform_6(%arg0: i32) -> (i32, i32) {
    %c0_i32 = arith.constant 0 : i32
    %c0_i32_0 = arith.constant 0 : i32
    %c0_i32_1 = arith.constant 0 : i32
    return %c0_i32, %c0_i32_0 : i32, i32
  }
  func.func @transform_7(%arg0: i32) -> (i32, i32) {
    %c0_i32 = arith.constant 0 : i32
    %c0_i32_0 = arith.constant 0 : i32
    return %arg0, %c0_i32 : i32, i32
  }
}

</mosaic_0001>

<bundles_post_ra>
// kernel: tpu_custom_call.1
= control target key start
LH: loop header
LB: loop body
LE: loop exit
PB: predicated region body
PF: predicated region fallthrough
CT: control target
= control target key end

     0   :  { %v395_v1 = vmov 0.0   ;;  %vm396_vm0 = vmmov 0   ;;  %s506_s0 = inlined_call_operand.vmem [shape: f32[8,32], index: 0, kind: input, shape index: {}]   ;;  %s507_s1 = inlined_call_operand.vmem [shape: f32[32,64], index: 1, kind: input, shape index: {}]   ;;  %s508_s2 = inlined_call_operand.vmem [shape: f32[1,64], index: 2, kind: input, shape index: {}]   ;;  %s509_s3 = inlined_call_operand.vmem [shape: f32[64,32], index: 3, kind: input, shape index: {}]   ;;  %s510_s4 = inlined_call_operand.vmem [shape: f32[1,32], index: 4, kind: input, shape index: {}]   ;;  %s511_s5 = inlined_call_operand.vmem [shape: f32[32,16], index: 5, kind: input, shape index: {}]   ;;  %s512_s6 = inlined_call_operand.vmem [shape: f32[1,16], index: 6, kind: input, shape index: {}]   ;;  %s513_s7 = inlined_call_operand.hbm [shape: f32[8,16], index: 7, kind: output, shape index: {}]  }
   0x1   :  { %v31_v0 = vld [vmem:[%s507_s1 + $0x18] sm:$0xff]  ;;  %329 = vmatprep.subr.mxu0 %v395_v1  ;;  %v30_v2 = vld [vmem:[%s507_s1 + $0x10] sm:$0xff]  ;;  %337 = vmatprep.mubr.msk.f32.mxu0 %vm396_vm0, %v395_v1  ;;  %v29_v5 = vld [vmem:[%s507_s1 + $0x8] sm:$0xff] }
   0x2   :  { %v121_v3 = vld [vmem:[%s509_s3 + $0x38] sm:$0xff]  ;;  %330 = vmatpush3.msra.mxu0 %v31_v0  ;;  %340 = vmatprep.subr.mxu1 %v395_v1  ;;  %v120_v4 = vld [vmem:[%s509_s3 + $0x30] sm:$0xff] }
   0x3   :  { %331 = vmatprep.subr.mxu0 %v395_v1  ;;  %341 = vmatpush3.msra.mxu1 %v121_v3 }
   0x4   :  { %12 = vsyncpa [#allocation3], 0  ;;  %332 = vmatpush3.msra.mxu0 %v30_v2  ;;  %342 = vmatprep.subr.mxu1 %v395_v1  ;;  %v119_v6 = vld [vmem:[%s509_s3 + $0x28] sm:$0xff]  ;;  %v28_v7 = vld [vmem:[%s507_s1] sm:$0xff]  ;;  %vm39_vm1 = vcmask 261120   ;;  %vm129_vm2 = vcmask 523264  }
   0x5   :  { %333 = vmatprep.subr.mxu0 %v395_v1  ;;  %343 = vmatpush3.msra.mxu1 %v120_v4  ;;  %v27_v8 = vld [vmem:[%s506_s0] sm:$0xff]  ;;  %v117_v10 = vld [vmem:[%s509_s3 + $0x18] sm:$0xff]  ;;  %v116_v11 = vld [vmem:[%s509_s3 + $0x10] sm:$0xff]  ;;  %s397_s14 = smov [#allocation2]   ;;  %vm288_vm3 = vcmask 130048  }
   0x6   :  { %334 = vmatpush3.msra.mxu0 %v29_v5  ;;  %344 = vmatprep.subr.mxu1 %v395_v1  ;;  %v118_v9 = vld [vmem:[%s509_s3 + $0x20] sm:$0xff]  ;;  %v115_v12 = vld [vmem:[%s509_s3 + $0x8] sm:$0xff]  ;;  %v207_v14 = vld [vmem:[%s511_s5 + $0x18] sm:$0xff]  ;;  %s296_s15 = sshll.u32 %s397_s14, 4  ;;  %s297_s15 = int_to_ptr.vmem [resolvable:$true] %s296_s15 }
   0x7   :  { %335 = vmatprep.subr.mxu0 %v395_v1  ;;  %345 = vmatpush3.msra.mxu1 %v119_v6  ;;  %v114_v13 = vld [vmem:[%s509_s3] sm:$0xff]  ;;  %v206_v20 = vld [vmem:[%s511_s5 + $0x10] sm:$0xff]  ;;  %v205_v21 = vld [vmem:[%s511_s5 + $0x8] sm:$0xff]  ;;  %p378_p1 = scmp.lt.s32.totalorder %s297_s15, %s297_s15 }
   0x8   :  { %336 = vmatpush3.msra.mxu0 %v28_v7  ;;  %346 = vmatprep.subr.mxu1 %v395_v1  ;;  %v304_v15 = vld [vmem:[%s508_s2] ss:$0 sm:$0xff] }
   0x9   :  { %338 = vmatmul.mubr.msk.f32.vlgmr.msra.gmra.mxu0 %vm39_vm1, %v27_v8  ;;  %347 = vmatpush3.msra.mxu1 %v118_v9  ;;  %v204_v22 = vld [vmem:[%s511_s5] sm:$0xff]  ;;  %s373_s5 = scalar_lea.vmem %s297_s15, 128 }
   0xa   :  { %348 = vmatprep.subr.mxu1 %v395_v1  ;;  %356 = vmatprep.mubr.msk.f32.mxu1 %vm396_vm0, %v395_v1  ;;  %v306_v23 = vld [vmem:[%s510_s4] ss:$0 sm:$0xff]  ;;  %p374_p0 = scmp.ne.s32.totalorder %s297_s15, %s373_s5  ;;  %p379_p2 = scmp.lt.s32.totalorder %s373_s5, %s373_s5 }
   0xb   :  { %349 = vmatpush3.msra.mxu1 %v117_v10  ;;  %359 = vmatprep.subr.mxu0 %v395_v1  ;;  %v308_v28 = vld [vmem:[%s512_s6] ss:$0 sm:$0xff] }
   0xc   :  { %350 = vmatprep.subr.mxu1 %v395_v1  ;;  %367 = vmatprep.mubr.msk.f32.mxu0 %vm396_vm0, %v395_v1  ;;  %p380_p3 = por %p379_p2, %p378_p1 }
   0xd   :  { %351 = vmatpush3.msra.mxu1 %v116_v11  ;;  %360 = vmatpush3.msra.mxu0 %v207_v14 }
   0xe   :  { %352 = vmatprep.subr.mxu1 %v395_v1  ;;  %361 = vmatprep.subr.mxu0 %v395_v1  ;;  %p381_p4 = pnand %p380_p3, %p374_p0 }
   0xf   :  { %353 = vmatpush3.msra.mxu1 %v115_v12  ;;  %362 = vmatpush3.msra.mxu0 %v206_v20 }
  0x10   :  { %354 = vmatprep.subr.mxu1 %v395_v1  ;;  %363 = vmatprep.subr.mxu0 %v395_v1 }
  0x11   :  { %355 = vmatpush3.msra.mxu1 %v114_v13  ;;  %364 = vmatpush3.msra.mxu0 %v205_v21 }
  0x12   :  { %365 = vmatprep.subr.mxu0 %v395_v1 }
  0x13   :  { %366 = vmatpush3.msra.mxu0 %v204_v22 }
  0xc9   :  { %v109_v16 = vpop.f32.mrf.mxu0 }
  0xca   :  { %v110_v17 = vadd.f32 %v304_v15, %v109_v16 }
  0xcb   :  { %v339_v18 = vpop.f32.mrf.mxu0 }
  0xcc   :  { %v113_v19 = vmax.f32 %v110_v17, 0.0 }
  0xce   :  { %357 = vmatmul.mubr.msk.f32.vlgmr.msra.gmra.mxu1 %vm129_vm2, %v113_v19 }
 0x18e   :  { %v199_v24 = vpop.f32.mrf.mxu1 }
 0x18f   :  { %v200_v25 = vadd.f32 %v306_v23, %v199_v24 }
 0x190   :  { %v358_v26 = vpop.f32.mrf.mxu1 }
 0x191   :  { %v203_v27 = vmax.f32 %v200_v25, 0.0 }
 0x193   :  { %368 = vmatmul.mubr.msk.f32.vlgmr.msra.gmra.mxu0 %vm39_vm1, %v203_v27 }
 0x253   :  { %v284_v29 = vpop.f32.mrf.mxu0 }
 0x254   :  { %v285_v30 = vadd.f32 %v308_v28, %v284_v29 }
 0x255   :  { %v369_v31 = vpop.f32.mrf.mxu0 }
 0x256   :  { %289 = vst.msk [vmem:[#allocation2] sm:$0xff] %vm288_vm3, %v285_v30 }
 0x257   :  { %384 = shalt.err (!%p381_p4)
}
 0x258   :  { %299 = dma.vmem_to_hbm [thread:$0]  %s297_s15, 128, %s513_s7, [#allocation3]  }
 0x259   :  { %393 = dma.done.wait [#allocation3], 128  }
 0x25a   :  { %394 = vsyncadd [#allocation3], 4294967168 }
 0x25b   :  { %303 = vsyncpa [#allocation3], 1 }

</bundles_post_ra>
